<compile_context>
chip_gen: v7x
topology: tpu7x:2x2x1
jax: 0.10.0
libtpu: 0.0.40
codegen_flags: <defaults>
</compile_context>

<pallas_src>
import jax
import jax.numpy as jnp
import numpy as np
from jax.experimental import pallas as pl
from jax.experimental.pallas import tpu as pltpu


def mlp_block_kernel(x_ref, taps_ref, wc_ref, w1t_ref, bns_ref, bnb_ref,
                     w2t_ref, ls_ref, o_ref, y_ref):
    # x_ref   : (1, C, HW)        one batch element, channels on sublanes, HW on lanes
    # taps_ref: (1, 9*Cc, HW)     im2col planes of the first Cc channels (tap-major, ci fastest)
    # wc_ref  : (Cc, 9*Cc)        3x3 conv weights, wc[co, tap*Cc + ci]
    # w1t_ref : (hidden, C)       1x1 conv #1 (transposed: Cout x Cin)
    # bns_ref/bnb_ref: (hidden,1) folded BatchNorm scale / bias
    # w2t_ref : (C, hidden)       1x1 conv #2 (transposed)
    # ls_ref  : (C, 1)            layer_scale
    # y_ref   : (C, HW)           VMEM scratch holding the spatially-mixed activation
    Cc = wc_ref.shape[0]

    x = x_ref[0]                                                  # (C, HW)

    # ---- Partial 3x3 conv: one im2col matmul, lane-dense on HW ----
    conv = jnp.dot(wc_ref[...], taps_ref[0],
                   preferred_element_type=jnp.float32)            # (Cc, HW)

    # ---- assemble mixed activation y = [conv ; x[Cc:]] in VMEM scratch ----
    y_ref[...] = x
    y_ref[0:Cc, :] = conv

    # ---- MLP: 1x1 conv -> folded BN -> ReLU -> 1x1 conv (single K=C matmul) ----
    h = jnp.dot(w1t_ref[...], y_ref[...],
                preferred_element_type=jnp.float32)               # (hidden, HW)
    h = jnp.maximum(h * bns_ref[...] + bnb_ref[...], 0.0)
    z = jnp.dot(w2t_ref[...], h,
                preferred_element_type=jnp.float32)               # (C, HW)

    # ---- residual + layer_scale ----
    o_ref[0] = x + ls_ref[...] * z


def mlp_block_pallas(x_nchw, params):
    """x_nchw: (N, C, H, W) float32. Returns (N, C, H, W)."""
    x = x_nchw.astype(jnp.float32)
    N, C, H, W = x.shape
    w3 = params["w3"]                      # (3, 3, Cc, Cc)  HWIO
    Cc = w3.shape[-1]
    hidden = params["w1"].shape[1]
    HW = H * W

    # Flatten NCHW spatially (free view in HBM): (N, C, HW) with hw = h*W + w.
    x2 = x.reshape(N, C, HW)

    # Wrapper-side im2col for the conv channels: 9 shifted planes of the padded input.
    xp = jnp.pad(x[:, :Cc], ((0, 0), (0, 0), (1, 1), (1, 1)))     # (N, Cc, H+2, W+2)
    taps = jnp.stack([xp[:, :, dh:dh + H, dw:dw + W]
                      for dh in range(3) for dw in range(3)], axis=1)   # (N, 9, Cc, H, W)
    taps = taps.reshape(N, 9 * Cc, HW)

    # Weight / param layouts for the (C, HW) kernel layout.
    wc = jnp.transpose(w3, (3, 0, 1, 2)).reshape(Cc, 9 * Cc)      # wc[co, tap*Cc + ci]
    w1t = params["w1"].T                                          # (hidden, C)
    w2t = params["w2"].T                                          # (C, hidden)
    bns = params["bn_scale"].reshape(hidden, 1)
    bnb = params["bn_bias"].reshape(hidden, 1)
    ls = params["layer_scale"].reshape(C, 1)

    flops = 2 * N * HW * (9 * Cc * Cc + 2 * C * hidden)
    bytes_accessed = 4 * (2 * N * C * HW + N * 9 * Cc * HW
                          + Cc * 9 * Cc + 2 * C * hidden + 2 * hidden + C)

    out = pl.pallas_call(
        mlp_block_kernel,
        out_shape=jax.ShapeDtypeStruct((N, C, HW), jnp.float32),
        grid_spec=pltpu.PrefetchScalarGridSpec(
            num_scalar_prefetch=0,
            grid=(N,),
            in_specs=[
                pl.BlockSpec((1, C, HW), lambda n: (n, 0, 0)),
                pl.BlockSpec((1, 9 * Cc, HW), lambda n: (n, 0, 0)),
                pl.BlockSpec((Cc, 9 * Cc), lambda n: (0, 0)),
                pl.BlockSpec((hidden, C), lambda n: (0, 0)),
                pl.BlockSpec((hidden, 1), lambda n: (0, 0)),
                pl.BlockSpec((hidden, 1), lambda n: (0, 0)),
                pl.BlockSpec((C, hidden), lambda n: (0, 0)),
                pl.BlockSpec((C, 1), lambda n: (0, 0)),
            ],
            out_specs=pl.BlockSpec((1, C, HW), lambda n: (n, 0, 0)),
            scratch_shapes=[pltpu.VMEM((C, HW), jnp.float32)],
        ),
        compiler_params=pltpu.CompilerParams(
            dimension_semantics=("parallel",)),
        cost_estimate=pl.CostEstimate(flops=flops, transcendentals=0,
                                      bytes_accessed=bytes_accessed),
    )(x2, taps, wc, w1t, bns, bnb, w2t, ls)

    return out.reshape(N, C, H, W)


def ref_forward(x_nchw, p):
    """Pure-JAX reference (same math, no Pallas)."""
    x = jnp.transpose(x_nchw, (0, 2, 3, 1))                       # NHWC
    Cc = p["w3"].shape[-1]
    x1 = jax.lax.conv_general_dilated(
        x[..., :Cc], p["w3"], window_strides=(1, 1), padding="SAME",
        dimension_numbers=("NHWC", "HWIO", "NHWC"))
    y = jnp.concatenate([x1, x[..., Cc:]], axis=-1)
    h = jnp.einsum("nhwc,cd->nhwd", y, p["w1"])
    h = h * p["bn_scale"] + p["bn_bias"]
    h = jnp.maximum(h, 0.0)
    z = jnp.einsum("nhwd,dc->nhwc", h, p["w2"])
    out = x + p["layer_scale"] * z
    return jnp.transpose(out, (0, 3, 1, 2))


def make_params(key, dim, n_div, mlp_ratio, layer_scale_init_value):
    Cc = dim // n_div
    hidden = int(dim * mlp_ratio)
    k = jax.random.split(key, 8)
    w3 = jax.random.normal(k[0], (3, 3, Cc, Cc), jnp.float32) * 0.1   # HWIO
    w1 = jax.random.normal(k[1], (dim, hidden), jnp.float32) * 0.1    # (Cin, Cout)
    w2 = jax.random.normal(k[2], (hidden, dim), jnp.float32) * 0.1
    # BatchNorm2d (eval mode) folded into an affine scale/bias.
    gamma = jax.random.uniform(k[3], (hidden,), jnp.float32, 0.5, 1.5)
    beta = jax.random.normal(k[4], (hidden,), jnp.float32) * 0.1
    r_mean = jax.random.normal(k[5], (hidden,), jnp.float32) * 0.1
    r_var = jax.random.uniform(k[6], (hidden,), jnp.float32, 0.5, 1.5)
    eps = 1e-5
    bn_scale = gamma / jnp.sqrt(r_var + eps)
    bn_bias = beta - r_mean * bn_scale
    layer_scale = layer_scale_init_value * jnp.ones((dim,), jnp.float32)
    return {"w3": w3, "w1": w1, "w2": w2, "bn_scale": bn_scale,
            "bn_bias": bn_bias, "layer_scale": layer_scale}


if __name__ == "__main__":
    # MLPBlock(dim=16, n_div=4, mlp_ratio=2.0, drop_path=0.0, layer_scale_init_value=0.1)
    N, dim, H, W = 2, 16, 16, 16
    n_div, mlp_ratio = 4, 2.0

    key = jax.random.PRNGKey(0)
    kx, kp = jax.random.split(key)
    x = jax.random.normal(kx, (N, dim, H, W), jnp.float32)   # NCHW, like PyTorch
    params = make_params(kp, dim, n_div, mlp_ratio, layer_scale_init_value=0.1)

    out = mlp_block_pallas(x, params)
    out = jax.block_until_ready(out)

    ref = jax.block_until_ready(ref_forward(x, params))
    np.testing.assert_allclose(np.asarray(out), np.asarray(ref),
                               rtol=1e-4, atol=1e-4)
    print("KERNEL_OK")
</pallas_src>

<mosaic_0001>
module attributes {stable_mosaic.version = 11 : i64} {
  func.func @mlp_block_kernel(%arg0: i32, %arg1: memref<1x16x256xf32, #tpu.memory_space<vmem>>, %arg2: memref<1x36x256xf32, #tpu.memory_space<vmem>>, %arg3: memref<4x36xf32, #tpu.memory_space<vmem>>, %arg4: memref<32x16xf32, #tpu.memory_space<vmem>>, %arg5: memref<32x1xf32, #tpu.memory_space<vmem>>, %arg6: memref<32x1xf32, #tpu.memory_space<vmem>>, %arg7: memref<16x32xf32, #tpu.memory_space<vmem>>, %arg8: memref<16x1xf32, #tpu.memory_space<vmem>>, %arg9: memref<1x16x256xf32, #tpu.memory_space<vmem>>, %arg10: memref<16x256xf32, #tpu.memory_space<vmem>>) attributes {dimension_semantics = [#tpu.dimension_semantics<parallel>], iteration_bounds = array<i64: 2>, scalar_prefetch = 0 : i64, scratch_operands = 1 : i64, tpu.core_type = #tpu.core_type<tc>, window_params = [{transform_indices = @transform_0, window_bounds = array<i64: 1, 16, 256>}, {transform_indices = @transform_1, window_bounds = array<i64: 1, 36, 256>}, {pipeline_mode = #tpu.pipeline_mode<synchronous>, transform_indices = @transform_2, window_bounds = array<i64: 4, 36>}, {pipeline_mode = #tpu.pipeline_mode<synchronous>, transform_indices = @transform_3, window_bounds = array<i64: 32, 16>}, {pipeline_mode = #tpu.pipeline_mode<synchronous>, transform_indices = @transform_4, window_bounds = array<i64: 32, 1>}, {pipeline_mode = #tpu.pipeline_mode<synchronous>, transform_indices = @transform_5, window_bounds = array<i64: 32, 1>}, {pipeline_mode = #tpu.pipeline_mode<synchronous>, transform_indices = @transform_6, window_bounds = array<i64: 16, 32>}, {pipeline_mode = #tpu.pipeline_mode<synchronous>, transform_indices = @transform_7, window_bounds = array<i64: 16, 1>}, {transform_indices = @transform_8, window_bounds = array<i64: 1, 16, 256>}]} {
    %c0 = arith.constant 0 : index
    %c0_0 = arith.constant 0 : index
    %c0_1 = arith.constant 0 : index
    %0 = vector.load %arg1[%c0, %c0_0, %c0_1] : memref<1x16x256xf32, #tpu.memory_space<vmem>>, vector<1x16x256xf32>
    %1 = vector.shape_cast %0 : vector<1x16x256xf32> to vector<16x256xf32>
    %c0_2 = arith.constant 0 : index
    %c0_3 = arith.constant 0 : index
    %2 = vector.load %arg3[%c0_2, %c0_3] : memref<4x36xf32, #tpu.memory_space<vmem>>, vector<4x36xf32>
    %c0_4 = arith.constant 0 : index
    %c0_5 = arith.constant 0 : index
    %c0_6 = arith.constant 0 : index
    %3 = vector.load %arg2[%c0_4, %c0_5, %c0_6] : memref<1x36x256xf32, #tpu.memory_space<vmem>>, vector<1x36x256xf32>
    %4 = vector.shape_cast %3 : vector<1x36x256xf32> to vector<36x256xf32>
    %cst = arith.constant dense<0.000000e+00> : vector<4x256xf32>
    %5 = tpu.matmul %2, %4, %cst {dimension_numbers = #tpu.dot_dimension_numbers<[1], [0], [0], [1], [0, 0, 1, 1], [], []>} : vector<4x36xf32>, vector<36x256xf32>, vector<4x256xf32> -> vector<4x256xf32>
    %c0_7 = arith.constant 0 : index
    %c0_8 = arith.constant 0 : index
    %6 = vector.load %arg10[%c0_7, %c0_8] : memref<16x256xf32, #tpu.memory_space<vmem>>, vector<16x256xf32>
    tpu.vector_store %arg10[%c0_7, %c0_8], %1 {strides = array<i32>} : memref<16x256xf32, #tpu.memory_space<vmem>>, vector<16x256xf32>,
    %c0_9 = arith.constant 0 : index
    %c0_10 = arith.constant 0 : index
    %7 = vector.load %arg10[%c0_9, %c0_10] : memref<16x256xf32, #tpu.memory_space<vmem>>, vector<4x256xf32>
    tpu.vector_store %arg10[%c0_9, %c0_10], %5 {strides = array<i32>} : memref<16x256xf32, #tpu.memory_space<vmem>>, vector<4x256xf32>,
    %c0_11 = arith.constant 0 : index
    %c0_12 = arith.constant 0 : index
    %8 = vector.load %arg4[%c0_11, %c0_12] : memref<32x16xf32, #tpu.memory_space<vmem>>, vector<32x16xf32>
    %c0_13 = arith.constant 0 : index
    %c0_14 = arith.constant 0 : index
    %9 = vector.load %arg10[%c0_13, %c0_14] : memref<16x256xf32, #tpu.memory_space<vmem>>, vector<16x256xf32>
    %cst_15 = arith.constant dense<0.000000e+00> : vector<32x256xf32>
    %10 = tpu.matmul %8, %9, %cst_15 {dimension_numbers = #tpu.dot_dimension_numbers<[1], [0], [0], [1], [0, 0, 1, 1], [], []>} : vector<32x16xf32>, vector<16x256xf32>, vector<32x256xf32> -> vector<32x256xf32>
    %c0_16 = arith.constant 0 : index
    %c0_17 = arith.constant 0 : index
    %11 = vector.load %arg5[%c0_16, %c0_17] : memref<32x1xf32, #tpu.memory_space<vmem>>, vector<32x1xf32>
    %12 = vector.broadcast %11 : vector<32x1xf32> to vector<32x256xf32>
    %13 = arith.mulf %10, %12 : vector<32x256xf32>
    %c0_18 = arith.constant 0 : index
    %c0_19 = arith.constant 0 : index
    %14 = vector.load %arg6[%c0_18, %c0_19] : memref<32x1xf32, #tpu.memory_space<vmem>>, vector<32x1xf32>
    %15 = vector.broadcast %14 : vector<32x1xf32> to vector<32x256xf32>
    %16 = arith.addf %13, %15 : vector<32x256xf32>
    %cst_20 = arith.constant 0.000000e+00 : f32
    %17 = vector.broadcast %cst_20 : f32 to vector<32x256xf32>
    %18 = arith.maximumf %16, %17 : vector<32x256xf32>
    %c0_21 = arith.constant 0 : index
    %c0_22 = arith.constant 0 : index
    %19 = vector.load %arg7[%c0_21, %c0_22] : memref<16x32xf32, #tpu.memory_space<vmem>>, vector<16x32xf32>
    %cst_23 = arith.constant dense<0.000000e+00> : vector<16x256xf32>
    %20 = tpu.matmul %19, %18, %cst_23 {dimension_numbers = #tpu.dot_dimension_numbers<[1], [0], [0], [1], [0, 0, 1, 1], [], []>} : vector<16x32xf32>, vector<32x256xf32>, vector<16x256xf32> -> vector<16x256xf32>
    %c0_24 = arith.constant 0 : index
    %c0_25 = arith.constant 0 : index
    %21 = vector.load %arg8[%c0_24, %c0_25] : memref<16x1xf32, #tpu.memory_space<vmem>>, vector<16x1xf32>
    %22 = vector.broadcast %21 : vector<16x1xf32> to vector<16x256xf32>
    %23 = arith.mulf %22, %20 : vector<16x256xf32>
    %24 = arith.addf %1, %23 : vector<16x256xf32>
    %c0_26 = arith.constant 0 : index
    %c0_27 = arith.constant 0 : index
    %c0_28 = arith.constant 0 : index
    %25 = vector.load %arg9[%c0_26, %c0_27, %c0_28] : memref<1x16x256xf32, #tpu.memory_space<vmem>>, vector<1x16x256xf32>
    %26 = vector.shape_cast %25 : vector<1x16x256xf32> to vector<16x256xf32>
    %27 = vector.shape_cast %24 : vector<16x256xf32> to vector<1x16x256xf32>
    tpu.vector_store %arg9[%c0_26, %c0_27, %c0_28], %27 {strides = array<i32>} : memref<1x16x256xf32, #tpu.memory_space<vmem>>, vector<1x16x256xf32>,
    return
  }
  func.func @transform_0(%arg0: i32) -> (i32, i32, i32) {
    %c0_i32 = arith.constant 0 : i32
    %c0_i32_0 = arith.constant 0 : i32
    %c0_i32_1 = arith.constant 0 : i32
    return %arg0, %c0_i32, %c0_i32_0 : i32, i32, i32
  }
  func.func @transform_1(%arg0: i32) -> (i32, i32, i32) {
    %c0_i32 = arith.constant 0 : i32
    %c0_i32_0 = arith.constant 0 : i32
    %c0_i32_1 = arith.constant 0 : i32
    return %arg0, %c0_i32, %c0_i32_0 : i32, i32, i32
  }
  func.func @transform_2(%arg0: i32) -> (i32, i32) {
    %c0_i32 = arith.constant 0 : i32
    %c0_i32_0 = arith.constant 0 : i32
    %c0_i32_1 = arith.constant 0 : i32
    return %c0_i32, %c0_i32_0 : i32, i32
  }
  func.func @transform_3(%arg0: i32) -> (i32, i32) {
    %c0_i32 = arith.constant 0 : i32
    %c0_i32_0 = arith.constant 0 : i32
    %c0_i32_1 = arith.constant 0 : i32
    return %c0_i32, %c0_i32_0 : i32, i32
  }
  func.func @transform_4(%arg0: i32) -> (i32, i32) {
    %c0_i32 = arith.constant 0 : i32
    %c0_i32_0 = arith.constant 0 : i32
    %c0_i32_1 = arith.constant 0 : i32
    return %c0_i32, %c0_i32_0 : i32, i32
  }
  func.func @transform_5(%arg0: i32) -> (i32, i32) {
    %c0_i32 = arith.constant 0 : i32
    %c0_i32_0 = arith.constant 0 : i32
    %c0_i32_1 = arith.constant 0 : i32
    return %c0_i32, %c0_i32_0 : i32, i32
  }
  func.func @transform_6(%arg0: i32) -> (i32, i32) {
    %c0_i32 = arith.constant 0 : i32
    %c0_i32_0 = arith.constant 0 : i32
    %c0_i32_1 = arith.constant 0 : i32
    return %c0_i32, %c0_i32_0 : i32, i32
  }
  func.func @transform_7(%arg0: i32) -> (i32, i32) {
    %c0_i32 = arith.constant 0 : i32
    %c0_i32_0 = arith.constant 0 : i32
    %c0_i32_1 = arith.constant 0 : i32
    return %c0_i32, %c0_i32_0 : i32, i32
  }
  func.func @transform_8(%arg0: i32) -> (i32, i32, i32) {
    %c0_i32 = arith.constant 0 : i32
    %c0_i32_0 = arith.constant 0 : i32
    %c0_i32_1 = arith.constant 0 : i32
    return %arg0, %c0_i32, %c0_i32_0 : i32, i32, i32
  }
}

</mosaic_0001>

<bundles_post_ra>
// kernel: tpu_custom_call.1
= control target key start
LH: loop header
LB: loop body
LE: loop exit
PB: predicated region body
PF: predicated region fallthrough
CT: control target
= control target key end

     0   :  { %13 = vsyncpa [#allocation4], 0  ;;  %s1201_s0 = inlined_call_operand.vmem [shape: f32[2,16,256], index: 0, kind: input, shape index: {}]   ;;  %s1202_s1 = inlined_call_operand.vmem [shape: f32[2,36,256], index: 1, kind: input, shape index: {}]   ;;  %s1203_s2 = inlined_call_operand.vmem [shape: f32[4,36], index: 2, kind: input, shape index: {}]   ;;  %s1204_s3 = inlined_call_operand.vmem [shape: f32[32,16], index: 3, kind: input, shape index: {}]   ;;  %s1205_s4 = inlined_call_operand.vmem [shape: f32[32,1], index: 4, kind: input, shape index: {}]   ;;  %s1206_s5 = inlined_call_operand.vmem [shape: f32[32,1], index: 5, kind: input, shape index: {}]   ;;  %s1207_s6 = inlined_call_operand.vmem [shape: f32[16,32], index: 6, kind: input, shape index: {}]   ;;  %s1208_s7 = inlined_call_operand.vmem [shape: f32[16,1], index: 7, kind: input, shape index: {}]   ;;  %s1209_s8 = inlined_call_operand.hbm [shape: f32[2,16,256], index: 8, kind: output, shape index: {}]  }
   0x1   :  { %15 = vsyncpa [#allocation4 + $0x1], 0  ;;  %s1015_s27 = smov 0   ;;  %s1017_s28 = smov 0  }
   0x2   :  { %s1019_s29 = smov 0   ;;  %s1021_s30 = smov 0  }
   0x3 LB: > { %s1036_s9 = sadd.s32 4294967295, %s963_s30   ;;  %s807_s10 = sadd.s32 4294967294, %s963_s30   ;;  %s963_s30 = sphi %s1021_s30, %s1215_s30   ;;  %s959_s29 = sphi %s1019_s29, %s1214_s29   ;;  %s955_s28 = sphi %s1017_s28, %s1213_s28   ;;  %s951_s27 = sphi %s1015_s27, %s1212_s27  }
   0x4   : > { %s1040_s11 = sadd.s32 1, %s963_s30   ;;  %s206_s12 = sadd.s32 1, %s959_s29 }
   0x5   : > { %s203_s13 = ssub.s32 %s963_s30, %s1040_s11  ;;  %p216_p0 = scmp.ne.s32.totalorder %s959_s29, %s955_s28 }
   0x6   : > { %p204_p1 = scmp.eq.s32.totalorder %s203_s13, 0  ;;  %p217_p2 = scmp.eq.s32.totalorder %s1036_s9, 1 }
   0x7   : > { %p222_p3 = scmp.ne.s32.totalorder %s955_s28, %s951_s27  ;;  %p223_p4 = scmp.eq.s32.totalorder %s807_s10, 1 }
   0x8   : > { %s1051_s14 = scalar_select %p204_p1, %s959_s29, %s206_s12  }
   0x9   : > { %p1053_p5 = por %p217_p2, %p216_p0  ;;  %p1057_p6 = por %p223_p4, %p222_p3 }
   0xa   : > { %p810_p7 = scmp.ge.s32.totalorder %s963_s30, 1  ;;  %p275_p8 = scmp.lt.s32.totalorder %s963_s30, 3 }
   0xc   : > { %p276_p9 = pnand %p810_p7, %p275_p8 }
   0xd   : > { %p314_p10 = scmp.lt.s32.totalorder (!%p276_p9), %s1036_s9, 1  ;;  %v965_v0 = vmov (!%p276_p9), 0.0   ;;  %vm343_vm0 = vcmask (!%p276_p9), 1043456   ;;  %v328_v18 = vld [vmem:[%s1203_s2] sm:$0xf] (!%p276_p9)  ;;  %vm339_vm1 = vcmask (!%p276_p9), 293888  }
   0xe   : > { %279 = sbr.rel (%p276_p9) target bundleno = 735 (0x2df), region = 52  ;;  %414 = vmatprep.mubr.f32.mxu0 (!%p276_p9), %v965_v0  ;;  %512 = vmatprep.mubr.f32.mxu1 (!%p276_p9), %v965_v0  ;;  %v537_v20 = vld [vmem:[%s1205_s4] sm:$0xff] (!%p276_p9)  ;;  %v966_v22 = vmov (!%p276_p9), 0   ;;  %v538_v23 = vld [vmem:[%s1205_s4 + $0x8] sm:$0xff] (!%p276_p9)  ;;  %v539_v25 = vld [vmem:[%s1205_s4 + $0x10] sm:$0xff] (!%p276_p9)  ;;  %vm435_vm2 = vcmask (!%p276_p9), 130048  }
   0xf   : > { %v569_v21 = vld [vmem:[%s1206_s5] sm:$0xff] (!%p276_p9)  ;;  %899 = vset.pattern.permute.xlu0 (!%p276_p9), %v966_v22  ;;  %900 = vset.pattern.permute.xlu1 (!%p276_p9), %v966_v22  ;;  %v570_v24 = vld [vmem:[%s1206_s5 + $0x8] sm:$0xff] (!%p276_p9)  ;;  %v540_v26 = vld [vmem:[%s1205_s4 + $0x18] sm:$0xff] (!%p276_p9)  ;;  %vm611_vm3 = vcmask (!%p276_p9), 261120   ;;  %s311_s21 = sand.u32 (!%p276_p9), 1, %s955_s28  }
  0x10   : > { %543 = vperm.xlu0 (!%p276_p9), %899, %v537_v20   ;;  %575 = vperm.xlu1 (!%p276_p9), %900, %v569_v21   ;;  %v571_v27 = vld [vmem:[%s1206_s5 + $0x10] sm:$0xff] (!%p276_p9)  ;;  %v572_v28 = vld [vmem:[%s1206_s5 + $0x18] sm:$0xff] (!%p276_p9)  ;;  %v695_v29 = vld [vmem:[%s1208_s7] sm:$0xff] (!%p276_p9) }
  0x11   : > { %v696_v30 = vld [vmem:[%s1208_s7 + $0x8] sm:$0xff] (!%p276_p9)  ;;  %v427_v37 = vld [vmem:[%s1204_s3] sm:$0xff] (!%p276_p9)  ;;  %v429_v39 = vld [vmem:[%s1204_s3 + $0x10] sm:$0xff] (!%p276_p9) }
  0x12   : > { %v428_v38 = vld [vmem:[%s1204_s3 + $0x8] sm:$0xff] (!%p276_p9)  ;;  %v430_v40 = vld [vmem:[%s1204_s3 + $0x18] sm:$0xff] (!%p276_p9) }
  0x14   : > { %548 = vperm.xlu0 (!%p276_p9), %899, %v538_v23   ;;  %580 = vperm.xlu1 (!%p276_p9), %900, %v570_v24  }
  0x15   : > { %s315_s17 = scalar_select %p314_p10, %s1036_s9, 1 }
  0x17   : > { %s855_s18 = smul.u32 80, %s315_s17  ;;  %s829_s19 = sshll.u32 %s315_s17, 5 }
  0x18   : > { %s1070_s22 = scalar_lea.vmem %s1201_s0, %s829_s19  ;;  %553 = vperm.xlu0 %899, %v539_v25   ;;  %558 = vperm.xlu1 %900, %v540_v26   ;;  %v609_v25 = vld [vmem:[%s1207_s6] sm:$0xff]  ;;  %v610_v26 = vld [vmem:[%s1207_s6 + $0x8] sm:$0xff]  ;;  %s967_s17 = smov [#allocation3]  }
  0x19   : > { %s323_s25 = scalar_lea.vmem %s1202_s1, %s855_s18  ;;  %v1076_v1 = vld [vmem:[%s1070_s22] sm:$0xff]  ;;  %v1079_v2 = vld [vmem:[%s1070_s22 + $0x10] sm:$0xff]  ;;  %v1082_v3 = vld [vmem:[%s1070_s22 + $0x18] sm:$0xff]  ;;  %s905_s18 = sshll.u32 %s967_s17, 4  ;;  %s906_s18 = int_to_ptr.vmem [resolvable:$false] %s905_s18 }
  0x1a   : > { %v330_v4 = vld [vmem:[%s323_s25 + $0x8] sm:$0xff]  ;;  %v332_v5 = vld [vmem:[%s323_s25 + $0x18] sm:$0xff]  ;;  %v329_v6 = vld [vmem:[%s323_s25] sm:$0xff]  ;;  %421 = vst [vmem:[#allocation2] sm:$0xff] %v1076_v1  ;;  %s907_s19 = scalar_lea.vmem %s906_s18, 1024 }
  0x1b   : > { %v831_v7 = vpack.c.bf16 %v332_v5, %v330_v4  ;;  %v331_v8 = vld [vmem:[%s323_s25 + $0x10] sm:$0xff]  ;;  %v334_v9 = vld [vmem:[%s323_s25 + $0x28] sm:$0xff]  ;;  %v336_v10 = vld [vmem:[%s323_s25 + $0x38] sm:$0xff] }
  0x1c   : > { %v833_v11 = vpack.c.bf16 %v331_v8, %v329_v6  ;;  %v835_v12 = vpack.c.bf16 %v336_v10, %v334_v9  ;;  %v333_v13 = vld [vmem:[%s323_s25 + $0x20] sm:$0xff]  ;;  %v335_v14 = vld [vmem:[%s323_s25 + $0x30] sm:$0xff]  ;;  %v338_v16 = vld [vmem:[%s323_s25 + $0x48] sm:$0xf]  ;;  %585 = vperm.xlu0 %899, %v571_v27   ;;  %590 = vperm.xlu1 %900, %v572_v28  }
  0x1d   : > { %832 = vmatprep.subr.bf16.mxu0 %v831_v7  ;;  %v837_v15 = vpack.c.bf16 %v335_v14, %v333_v13  ;;  %v337_v17 = vld [vmem:[%s323_s25 + $0x40] sm:$0xf]  ;;  %v1090_v19 = vld [vmem:[%s1070_s22 + $0x8] sm:$0xff]  ;;  %s811_s22 = sshll.u32 %s311_s21, 5  ;;  %s830_s25 = sshll.u32 %s1036_s9, 9 }
  0x1e   : > { %834 = vmatpush1.bf16.msra.mxu0 %v833_v11  ;;  %422 = vst [vmem:[#allocation2 + $0x8] sm:$0xff] %v1090_v19  ;;  %s313_s23 = scalar_lea.vmem [#allocation3], %s811_s22  ;;  %s1156_s12 = scalar_lea.hbm %s1209_s8, %s830_s25 }
  0x1f   : > { %836 = vmatprep.subr.bf16.mxu0 %v835_v12  ;;  %s733_s24 = sshll.u32 %s313_s23, 4  ;;  %s1160_s9 = scalar_lea.sflag [#allocation4], %s311_s21  ;;  %s1150_s24 = int_to_ptr.vmem [resolvable:$true] %s733_s24 }
  0x20   : > { %699 = vperm.xlu0 %899, %v695_v29   ;;  %704 = vperm.xlu1 %900, %v696_v30   ;;  %s901_s13 = scalar_lea.vmem %s1150_s24, 512  ;;  %p908_p0 = scmp.lt.s32.totalorder %s1150_s24, %s906_s18 }
  0x21   : > { %p902_p11 = scmp.ne.s32.totalorder %s1150_s24, %s901_s13  ;;  %p909_p1 = scmp.lt.s32.totalorder %s907_s19, %s901_s13 }
  0x22   : > { %838 = vmatpush1.bf16.msra.mxu0 %v837_v15 }
  0x23   : > { %815 = vmatprep.subr.msk.mxu0 %vm343_vm0, %v338_v16  ;;  %p903_p12 = pnand %p902_p11, %p1053_p5  ;;  %p910_p2 = por %p909_p1, %p908_p0 }
  0x25   : > { %p904_p13 = pneg %p903_p12 }
  0x26   : > { %816 = vmatpush1.msk.msra.mxu0 %vm343_vm0, %v337_v17 }
  0x27   : > { %817 = vmatmul.mubr.msk.f32.vlgmr.msra.gmra.mrb[0].mxu0 %vm339_vm1, %v328_v18  ;;  %p911_p3 = pnand %p910_p2, %p904_p13 }
  0x28   : > { %682 = vmatprep.mubr.f32.mxu0 %v965_v0 }
  0x8f   : > { %v544_v41 = vpop.permute.xlu0 %543  ;;  %v576_v42 = vpop.permute.xlu1 %575 }
  0x93   : > { %v549_v43 = vpop.permute.xlu0 %548  ;;  %v581_v47 = vpop.permute.xlu1 %580 }
  0x97   : > { %v554_v53 = vpop.permute.xlu0 %553  ;;  %v559_v57 = vpop.permute.xlu1 %558 }
  0x9b   : > { %v586_v7 = vpop.permute.xlu0 %585  ;;  %v591_v13 = vpop.permute.xlu1 %590 }
  0x9f   : > { %v700_v27 = vpop.permute.xlu0 %699  ;;  %v705_v28 = vpop.permute.xlu1 %704 }
  0xfa   : > { %v416_v31 = vpop.f32.mrb[0].mxu0 }
  0xfb   : > { %425 = vst [vmem:[#allocation2] sm:$0xf] %v416_v31  ;;  %v418_v32 = vpop.f32.mrb[1].mxu0 }
  0xfc   : > { %426 = vst [vmem:[#allocation2 + $0x8] sm:$0xf] %v418_v32 }
 0x102   : > { %v431_v33 = vld [vmem:[#allocation2] sm:$0xff] }
 0x103   : > { %v432_v34 = vld [vmem:[#allocation2 + $0x8] sm:$0xff]  ;;  %v841_v36 = vpack.c.bf16 %v1079_v2, %v431_v33 }
 0x104   : > { %v839_v35 = vpack.c.bf16 %v1082_v3, %v432_v34 }
 0x106   : > { %840 = vmatprep.subr.bf16.mxu1 %v839_v35 }
 0x107   : > { %842 = vmatpush1.bf16.msra.mxu1 %v841_v36 }
 0x10a   : > { %818 = vmatmul.mubr.msk.f32.vlgmr.msra.gmra.mrb[0].mxu1 %vm435_vm2, %v427_v37 }
 0x10b   : > { %518 = vmatprep.mubr.f32.mxu1 %v965_v0 }
 0x10e   : > { %819 = vmatmul.mubr.msk.f32.gmra.mrb[2].mxu1 %vm435_vm2, %v428_v38 }
 0x10f   : > { %524 = vmatprep.mubr.f32.mxu1 %v965_v0 }
 0x112   : > { %820 = vmatmul.mubr.msk.f32.gmra.mrb[4].mxu1 %vm435_vm2, %v429_v39 }
 0x113   : > { %530 = vmatprep.mubr.f32.mxu1 %v965_v0 }
 0x116   : > { %821 = vmatmul.mubr.msk.f32.gmra.mrb[6].mxu1 %vm435_vm2, %v430_v40 }
 0x117   : > { %688 = vmatprep.mubr.f32.mxu1 %v965_v0 }
 0x1dd   : > { %v514_v44 = vpop.f32.mrb[0].mxu1 }
 0x1de   : > { %v561_v45 = vmul.f32 %v544_v41, %v514_v44  ;;  %v516_v46 = vpop.f32.mrb[1].mxu1 }
 0x1df   : > { %v562_v48 = vmul.f32 %v544_v41, %v516_v46 }
 0x1e0   : > { %v593_v50 = vadd.f32 %v576_v42, %v561_v45 }
 0x1e1   : > { %v520_v49 = vpop.f32.mrb[2].mxu1  ;;  %v594_v54 = vadd.f32 %v576_v42, %v562_v48 }
 0x1e2   : > { %v563_v51 = vmul.f32 %v549_v43, %v520_v49  ;;  %v522_v52 = vpop.f32.mrb[3].mxu1  ;;  %v601_v60 = vmax.f32 %v593_v50, 0.0 }
 0x1e3   : > { %v564_v55 = vmul.f32 %v549_v43, %v522_v52  ;;  %v602_v0 = vmax.f32 %v594_v54, 0.0 }
 0x1e4   : > { %v595_v56 = vadd.f32 %v581_v47, %v563_v51 }
 0x1e5   : > { %v596_v58 = vadd.f32 %v581_v47, %v564_v55  ;;  %v526_v59 = vpop.f32.mrb[4].mxu1 }
 0x1e6   : > { %v603_v61 = vmax.f32 %v595_v56, 0.0  ;;  %v565_v62 = vmul.f32 %v554_v53, %v526_v59  ;;  %v528_v63 = vpop.f32.mrb[5].mxu1 }
 0x1e7   : > { %v604_v4 = vmax.f32 %v596_v58, 0.0  ;;  %v566_v5 = vmul.f32 %v554_v53, %v528_v63 }
 0x1e8   : > { %v845_v6 = vpack.c.bf16 %v603_v61, %v601_v60  ;;  %v597_v10 = vadd.f32 %v586_v7, %v565_v62 }
 0x1e9   : > { %v532_v8 = vpop.f32.mrb[6].mxu1  ;;  %v843_v9 = vpack.c.bf16 %v604_v4, %v602_v0  ;;  %v598_v14 = vadd.f32 %v586_v7, %v566_v5 }
 0x1ea   : > { %v567_v11 = vmul.f32 %v559_v57, %v532_v8  ;;  %v534_v12 = vpop.f32.mrb[7].mxu1  ;;  %v605_v18 = vmax.f32 %v597_v10, 0.0 }
 0x1eb   : > { %v568_v15 = vmul.f32 %v559_v57, %v534_v12  ;;  %844 = vmatprep.subr.bf16.mxu0 %v843_v9  ;;  %851 = vmatprep.subr.bf16.mxu1 %v843_v9  ;;  %v606_v21 = vmax.f32 %v598_v14, 0.0 }
 0x1ec   : > { %v599_v16 = vadd.f32 %v591_v13, %v567_v11  ;;  %846 = vmatpush1.bf16.msra.mxu0 %v845_v6  ;;  %853 = vmatpush1.bf16.msra.mxu1 %v845_v6 }
 0x1ed   : > { %v600_v17 = vadd.f32 %v591_v13, %v568_v15 }
 0x1ee   : > { %v607_v20 = vmax.f32 %v599_v16, 0.0 }
 0x1ef   : > { %v608_v22 = vmax.f32 %v600_v17, 0.0 }
 0x1f0   : > { %v849_v23 = vpack.c.bf16 %v607_v20, %v605_v18 }
 0x1f1   : > { %v847_v24 = vpack.c.bf16 %v608_v22, %v606_v21 }
 0x1f3   : > { %848 = vmatprep.subr.bf16.mxu0 %v847_v24  ;;  %852 = vmatprep.subr.bf16.mxu1 %v847_v24 }
 0x1f4   : > { %850 = vmatpush1.bf16.msra.mxu0 %v849_v23  ;;  %854 = vmatpush1.bf16.msra.mxu1 %v849_v23 }
 0x1f7   : > { %822 = vmatmul.mubr.msk.f32.vlgmr.msra.gmra.mrb[2].mxu0 %vm611_vm3, %v609_v25  ;;  %823 = vmatmul.mubr.msk.f32.vlgmr.msra.gmra.mrb[8].mxu1 %vm611_vm3, %v610_v26 }
 0x2ca   : > { %v684_v29 = vpop.f32.mrb[2].mxu0  ;;  %v690_v30 = vpop.f32.mrb[8].mxu1 }
 0x2cb   : > { %v707_v31 = vmul.f32 %v700_v27, %v684_v29  ;;  %v709_v32 = vmul.f32 %v705_v28, %v690_v30  ;;  %v686_v33 = vpop.f32.mrb[3].mxu0  ;;  %v692_v34 = vpop.f32.mrb[9].mxu1 }
 0x2cc   : > { %v708_v35 = vmul.f32 %v700_v27, %v686_v33  ;;  %v710_v36 = vmul.f32 %v705_v28, %v692_v34 }
 0x2cd   : > { %v711_v37 = vadd.f32 %v707_v31, %v1076_v1  ;;  %v713_v38 = vadd.f32 %v709_v32, %v1079_v2 }
 0x2ce   : > { %v712_v39 = vadd.f32 %v708_v35, %v1090_v19  ;;  %v714_v40 = vadd.f32 %v710_v36, %v1082_v3 }
 0x2cf   : > { %715 = vst [vmem:[%s313_s23] sm:$0xff] %v711_v37  ;;  %717 = vst [vmem:[%s313_s23 + $0x10] sm:$0xff] %v713_v38 }
 0x2d0   : > { %716 = vst [vmem:[%s313_s23 + $0x8] sm:$0xff] %v712_v39  ;;  %718 = vst [vmem:[%s313_s23 + $0x18] sm:$0xff] %v714_v40 }
 0x2d1   : > { %914 = shalt.err (!%p911_p3)
}
 0x2d2   : > { %s915_s20 = scalar_lea.hbm %s1156_s12, 512  ;;  %s919_s23 = scalar_lea.hbm %s1209_s8, 1024 }
 0x2d3   : > { %p916_p4 = scmp.ne.s32.totalorder %s1156_s12, %s915_s20  ;;  %p920_p9 = scmp.lt.u32.totalorder %s1156_s12, %s1209_s8 }
 0x2d4   : > { %p921_p10 = scmp.lt.u32.totalorder %s919_s23, %s915_s20  ;;  %p923_p12 = scmp.lt.u32.totalorder %s915_s20, %s1156_s12 }
 0x2d5   : > { %p917_p7 = pnand %p916_p4, %p1053_p5 }
 0x2d6   : > { %p922_p11 = por %p921_p10, %p920_p9 }
 0x2d7   : > { %p918_p8 = pneg %p917_p7 }
 0x2d8   : > { %p924_p13 = por %p923_p12, %p922_p11 }
 0x2da   : > { %p925_p0 = pnand %p924_p13, %p918_p8 }
 0x2dc   : > { %928 = shalt.err (!%p925_p0)
}
 0x2dd   : > { %s968_s10 = smov 256   ;;  %s969_s13 = smov 16  }
 0x2de   : > { %856 = dma.vmem_to_hbm [thread:$0]  (%p1053_p5), %s1150_s24, 512, %s1156_s12, %s1160_s9, %s968_s10, %s968_s10, %s969_s13  }
 0x2df PF: > { %p862_p1 = scmp.ge.s32.totalorder %s963_s30, 2  ;;  %s748_s17 = sand.u32 1, %s951_s27  }
 0x2e0   : > { %s749_s18 = scalar_lea.sflag [#allocation4], %s748_s17 }
 0x2e1   : > { %p859_p2 = pnand %p862_p1, %p1057_p6 }
 0x2e3   : > { %946 = dma.done.wait (!%p859_p2), %s749_s18, 512  }
 0x2e4   : > { %948 = vsyncadd (!%p859_p2), %s749_s18, 4294966784  ;;  %p18_p3 = scmp.ge.s32.totalorder %s1040_s11, 4   ;;  %s1212_s27 = smov %s955_s28 }
 0x2e5   : > { %s1213_s28 = smov %s959_s29  ;;  %s1214_s29 = smov %s1051_s14 }
 0x2e6   : > { %s1215_s30 = smov %s1040_s11  ;;  %20 = sbr.rel (!%p18_p3) target bundleno = 3 (0x3), region = 90 }
 0x2ed   :  { %754 = vsyncpa [#allocation4], 1 }
 0x2ee   :  { %756 = vsyncpa [#allocation4 + $0x1], 1 }

</bundles_post_ra>
